<compile_context>
chip_gen: v6e
topology: v6e:2x2x1
jax: 0.10.0
libtpu: 0.0.40
codegen_flags: <defaults>
</compile_context>

<pallas_src>
import functools

import jax
import jax.numpy as jnp
from jax.experimental import pallas as pl
from jax.experimental.pallas import tpu as pltpu


def _coupling_kernel(copy_size, trans_size,
                     s_emb_ref, action_ref, logpi_ref,
                     w1s_ref, w1c_ref, b1_ref, w2_ref, b2_ref,
                     action_out_ref, logpi_out_ref):
    # Feature-major tiles: features on sublanes, batch on lanes.
    s_emb = s_emb_ref[...]                          # [2A, tb]
    a_copy = action_ref[:copy_size, :]              # [copy, tb]
    a_trans = action_ref[copy_size:, :]             # [trans, tb]

    # Fused first layer of BOTH branches: h = [h_s ; h_t], 2*hid rows.
    # W1^T @ x^T decomposed as W1s^T @ s_emb^T + W1c^T @ a_copy^T (no concat of x).
    # Batch dim (tb) is the MXU output lane axis -> lane-dense result path.
    h = (jnp.dot(w1s_ref[...], s_emb.astype(jnp.float32),
                 preferred_element_type=jnp.float32)
         + jnp.dot(w1c_ref[...], a_copy.astype(jnp.float32),
                   preferred_element_type=jnp.float32)
         + b1_ref[...])                             # [2*hid, tb]
    h = jnp.maximum(h, 0.0)

    # Fused second layer via block-diagonal (transposed) weights: y = [s ; t].
    y = jnp.dot(w2_ref[...], h, preferred_element_type=jnp.float32) + b2_ref[...]
    s = y[:trans_size, :]                           # [trans, tb]
    t = y[trans_size:, :]                           # [trans, tb]

    out_transform = t + a_trans.astype(jnp.float32) * jnp.exp(s)

    # Single lane-dense store of the whole output tile (sublane concat in-register).
    action_out_ref[...] = jnp.concatenate(
        [a_copy.astype(action_out_ref.dtype),
         out_transform.astype(action_out_ref.dtype)], axis=0)

    # log_pi - sum(s) : sublane (XLU) reduce, one lane-dense (1, tb) store.
    logpi_out_ref[...] = (logpi_ref[...].astype(jnp.float32)
                          - jnp.sum(s, axis=0, keepdims=True))


def pack_params(params, action_size):
    """Fuse the two branch MLPs into packed, transposed weights (once, at init time)."""
    spw, spb, sw, sb, tpw, tpb, tw, tnb = params
    A = action_size
    hid = A
    copy_size = A // 2
    trans_size = A - copy_size

    # First layers packed along the output axis then transposed: [2*hid, in_dim].
    w1 = jnp.concatenate([spw, tpw], axis=1)        # [2A+copy, 2*hid]
    b1 = jnp.concatenate([spb, tpb], axis=1)        # [1, 2*hid]
    w1s_t = w1[:2 * A, :].T                         # [2*hid, 2A]   (state-embedding rows)
    w1c_t = w1[2 * A:, :].T                         # [2*hid, copy] (action-copy rows)
    b1_t = b1.T                                     # [2*hid, 1]

    # Second layers packed block-diagonally, transposed: [2*trans, 2*hid]; y^T = [s ; t].
    z = jnp.zeros((hid, trans_size), dtype=sw.dtype)
    w2 = jnp.concatenate(
        [jnp.concatenate([sw, z], axis=1),
         jnp.concatenate([z, tw], axis=1)], axis=0)  # [2*hid, 2*trans]
    w2_t = w2.T                                      # [2*trans, 2*hid]
    b2_t = jnp.concatenate([sb, tnb], axis=1).T      # [2*trans, 1]
    return (w1s_t, w1c_t, b1_t, w2_t, b2_t)


def coupling_layer_forward_t(action_t, state_embedding_t, log_pi, packed_params,
                             action_size, parity="odd", tile_b=8192):
    """Pallas-backed CouplingLayer forward on feature-major (transposed) activations.

    action_t:          [A, B]
    state_embedding_t: [2A, B]
    log_pi:            [B]
    Returns (action_out_t [A, B], log_pi_out [B]).
    """
    assert parity == "odd", "only parity='odd' is implemented"
    A, B = action_t.shape
    assert A == action_size
    assert state_embedding_t.shape == (2 * A, B)
    copy_size = A // 2
    trans_size = A - copy_size

    w1s_t, w1c_t, b1_t, w2_t, b2_t = packed_params
    log_pi_2d = log_pi.reshape(1, B)

    # Batch-tile (lane) size: multiple of 128, large to amortize per-step overhead,
    # but split >=2 ways when possible so the parallel grid axis spans both v7x TCs.
    tile_b = max(128, (int(tile_b) // 128) * 128)
    if B <= 256:
        tb = B                                   # single block; lane dim == full array dim
    else:
        half = pl.cdiv(pl.cdiv(B, 2), 128) * 128
        tb = min(tile_b, half)
    grid = (pl.cdiv(B, tb),)                     # ragged last block handled by Pallas

    kernel = functools.partial(_coupling_kernel, copy_size, trans_size)

    def act_spec(feat):
        # Feature-major block: full feature extent on sublanes, tb batch lanes.
        return pl.BlockSpec((feat, tb), lambda i: (0, i))

    def weight_spec(arr):
        # Full-extent block, constant index_map -> stays VMEM-resident across steps.
        return pl.BlockSpec(arr.shape, lambda i: (0, 0))

    action_out_t, log_pi_out = pl.pallas_call(
        kernel,
        grid=grid,
        in_specs=[
            act_spec(2 * A),          # state_embedding^T
            act_spec(A),              # action^T  (sliced into copy/transform in-kernel)
            act_spec(1),              # log_pi (1, B)  -- lane-dense
            weight_spec(w1s_t), weight_spec(w1c_t), weight_spec(b1_t),
            weight_spec(w2_t), weight_spec(b2_t),
        ],
        out_specs=(
            act_spec(A),              # action_out^T
            act_spec(1),              # log_pi_out (1, B)
        ),
        out_shape=(
            jax.ShapeDtypeStruct((A, B), action_t.dtype),
            jax.ShapeDtypeStruct((1, B), jnp.float32),
        ),
        compiler_params=pltpu.CompilerParams(
            dimension_semantics=("parallel",)),   # batch axis spans both TCs on v7x
    )(state_embedding_t, action_t, log_pi_2d,
      w1s_t, w1c_t, b1_t, w2_t, b2_t)

    return action_out_t, log_pi_out.reshape(B)


def coupling_layer_forward(action, state_embedding, log_pi, packed_params,
                           action_size, parity="odd", tile_b=8192):
    """Batch-major convenience wrapper matching the PyTorch module's interface.

    For peak performance keep activations feature-major in the surrounding
    pipeline and call coupling_layer_forward_t directly (avoids the boundary
    transposes, which re-read/write the activations once in XLA).
    Activations may be bf16; matmuls always accumulate in f32.
    """
    action_out_t, log_pi_out = coupling_layer_forward_t(
        action.T, state_embedding.T, log_pi, packed_params,
        action_size, parity=parity, tile_b=tile_b)
    return action_out_t.T, log_pi_out


def init_params(key, action_size, parity="odd", dtype=jnp.float32):
    """Deterministic synthetic init matching the module's parameter shapes."""
    copy_size = action_size // 2 if parity == "odd" else action_size - action_size // 2
    trans_size = action_size - copy_size
    in_dim = action_size * 2 + copy_size
    hid = action_size

    ks = jax.random.split(key, 8)

    def dense(k, fan_in, fan_out, scale):
        return scale * jax.random.normal(k, (fan_in, fan_out), dtype=dtype)

    # scale prenet / net, translation prenet / net (weights [in, out], biases [1, out])
    spw = dense(ks[0], in_dim, hid, (2.0 / in_dim) ** 0.5)
    spb = jnp.zeros((1, hid), dtype=dtype)
    sw = dense(ks[1], hid, trans_size, 0.003)          # outer_init-like small scale
    sb = jnp.zeros((1, trans_size), dtype=dtype)
    tpw = dense(ks[2], in_dim, hid, (2.0 / in_dim) ** 0.5)
    tpb = jnp.zeros((1, hid), dtype=dtype)
    tw = dense(ks[3], hid, trans_size, 0.003)
    tnb = jnp.zeros((1, trans_size), dtype=dtype)
    return (spw, spb, sw, sb, tpw, tpb, tw, tnb)


def reference_forward(action, state_embedding, log_pi, params, action_size):
    """Pure-JAX reference (mirrors the PyTorch forward, parity='odd')."""
    copy_size = action_size // 2
    a_copy = action[:, :copy_size]
    a_trans = action[:, copy_size:]
    x = jnp.concatenate([state_embedding, a_copy], axis=1)
    spw, spb, sw, sb, tpw, tpb, tw, tnb = params
    s = jnp.maximum(x @ spw + spb, 0.0) @ sw + sb
    t = jnp.maximum(x @ tpw + tpb, 0.0) @ tw + tnb
    out_transform = t + a_trans * jnp.exp(s)
    action_out = jnp.concatenate([a_copy, out_transform], axis=1)
    log_pi_out = log_pi - jnp.sum(s, axis=1)
    return action_out, log_pi_out


if __name__ == "__main__":
    key = jax.random.PRNGKey(0)
    k_params, k_action, k_state, k_logpi = jax.random.split(key, 4)

    action_size = 8          # => copy_size=4, state_embedding size = 16
    params = init_params(k_params, action_size)
    packed = pack_params(params, action_size)

    # --- small single-block check ---
    batch = 8
    action = jax.random.normal(k_action, (batch, action_size), dtype=jnp.float32)
    state_embedding = jax.random.normal(k_state, (batch, action_size * 2), dtype=jnp.float32)
    log_pi = jax.random.normal(k_logpi, (batch,), dtype=jnp.float32)

    action_out, log_pi_out = coupling_layer_forward(
        action, state_embedding, log_pi, packed, action_size, parity="odd")
    jax.block_until_ready((action_out, log_pi_out))

    ref_action, ref_log_pi = reference_forward(
        action, state_embedding, log_pi, params, action_size)
    assert action_out.shape == (batch, action_size)
    assert log_pi_out.shape == (batch,)
    assert jnp.allclose(action_out, ref_action, atol=1e-4, rtol=1e-4)
    assert jnp.allclose(log_pi_out, ref_log_pi, atol=1e-4, rtol=1e-4)

    # --- multi-block grid with a ragged last block (no wrapper padding) ---
    batch2 = 300
    k2a, k2s, k2l = jax.random.split(jax.random.PRNGKey(1), 3)
    action2 = jax.random.normal(k2a, (batch2, action_size), dtype=jnp.float32)
    state2 = jax.random.normal(k2s, (batch2, action_size * 2), dtype=jnp.float32)
    log_pi2 = jax.random.normal(k2l, (batch2,), dtype=jnp.float32)

    action_out2, log_pi_out2 = coupling_layer_forward(
        action2, state2, log_pi2, packed, action_size, parity="odd", tile_b=128)
    jax.block_until_ready((action_out2, log_pi_out2))

    ref_action2, ref_log_pi2 = reference_forward(
        action2, state2, log_pi2, params, action_size)
    assert jnp.allclose(action_out2, ref_action2, atol=1e-4, rtol=1e-4)
    assert jnp.allclose(log_pi_out2, ref_log_pi2, atol=1e-4, rtol=1e-4)

    print("KERNEL_OK")
</pallas_src>

<mosaic_0001>
module attributes {stable_mosaic.version = 11 : i64} {
  func.func @_coupling_kernel(%arg0: i32, %arg1: memref<16x8xf32, #tpu.memory_space<vmem>>, %arg2: memref<8x8xf32, #tpu.memory_space<vmem>>, %arg3: memref<1x8xf32, #tpu.memory_space<vmem>>, %arg4: memref<16x16xf32, #tpu.memory_space<vmem>>, %arg5: memref<16x4xf32, #tpu.memory_space<vmem>>, %arg6: memref<16x1xf32, #tpu.memory_space<vmem>>, %arg7: memref<8x16xf32, #tpu.memory_space<vmem>>, %arg8: memref<8x1xf32, #tpu.memory_space<vmem>>, %arg9: memref<8x8xf32, #tpu.memory_space<vmem>>, %arg10: memref<1x8xf32, #tpu.memory_space<vmem>>) attributes {dimension_semantics = [#tpu.dimension_semantics<parallel>], iteration_bounds = array<i64: 1>, scalar_prefetch = 0 : i64, scratch_operands = 0 : i64, tpu.core_type = #tpu.core_type<tc>, window_params = [{transform_indices = @transform_0, window_bounds = array<i64: 16, 8>}, {transform_indices = @transform_1, window_bounds = array<i64: 8, 8>}, {transform_indices = @transform_2, window_bounds = array<i64: 1, 8>}, {pipeline_mode = #tpu.pipeline_mode<synchronous>, transform_indices = @transform_3, window_bounds = array<i64: 16, 16>}, {pipeline_mode = #tpu.pipeline_mode<synchronous>, transform_indices = @transform_4, window_bounds = array<i64: 16, 4>}, {pipeline_mode = #tpu.pipeline_mode<synchronous>, transform_indices = @transform_5, window_bounds = array<i64: 16, 1>}, {pipeline_mode = #tpu.pipeline_mode<synchronous>, transform_indices = @transform_6, window_bounds = array<i64: 8, 16>}, {pipeline_mode = #tpu.pipeline_mode<synchronous>, transform_indices = @transform_7, window_bounds = array<i64: 8, 1>}, {transform_indices = @transform_8, window_bounds = array<i64: 8, 8>}, {transform_indices = @transform_9, window_bounds = array<i64: 1, 8>}]} {
    %c0 = arith.constant 0 : index
    %c0_0 = arith.constant 0 : index
    %0 = vector.load %arg1[%c0, %c0_0] : memref<16x8xf32, #tpu.memory_space<vmem>>, vector<16x8xf32>
    %c0_1 = arith.constant 0 : index
    %c0_2 = arith.constant 0 : index
    %1 = vector.load %arg2[%c0_1, %c0_2] : memref<8x8xf32, #tpu.memory_space<vmem>>, vector<4x8xf32>
    %c4 = arith.constant 4 : index
    %c0_3 = arith.constant 0 : index
    %2 = vector.load %arg2[%c4, %c0_3] : memref<8x8xf32, #tpu.memory_space<vmem>>, vector<4x8xf32>
    %c0_4 = arith.constant 0 : index
    %c0_5 = arith.constant 0 : index
    %3 = vector.load %arg4[%c0_4, %c0_5] : memref<16x16xf32, #tpu.memory_space<vmem>>, vector<16x16xf32>
    %cst = arith.constant dense<0.000000e+00> : vector<16x8xf32>
    %4 = tpu.matmul %3, %0, %cst {dimension_numbers = #tpu.dot_dimension_numbers<[1], [0], [0], [1], [0, 0, 1, 1], [], []>} : vector<16x16xf32>, vector<16x8xf32>, vector<16x8xf32> -> vector<16x8xf32>
    %c0_6 = arith.constant 0 : index
    %c0_7 = arith.constant 0 : index
    %5 = vector.load %arg5[%c0_6, %c0_7] : memref<16x4xf32, #tpu.memory_space<vmem>>, vector<16x4xf32>
    %cst_8 = arith.constant dense<0.000000e+00> : vector<16x8xf32>
    %6 = tpu.matmul %5, %1, %cst_8 {dimension_numbers = #tpu.dot_dimension_numbers<[1], [0], [0], [1], [0, 0, 1, 1], [], []>} : vector<16x4xf32>, vector<4x8xf32>, vector<16x8xf32> -> vector<16x8xf32>
    %7 = arith.addf %4, %6 : vector<16x8xf32>
    %c0_9 = arith.constant 0 : index
    %c0_10 = arith.constant 0 : index
    %8 = vector.load %arg6[%c0_9, %c0_10] : memref<16x1xf32, #tpu.memory_space<vmem>>, vector<16x1xf32>
    %9 = vector.broadcast %8 : vector<16x1xf32> to vector<16x8xf32>
    %10 = arith.addf %7, %9 : vector<16x8xf32>
    %cst_11 = arith.constant 0.000000e+00 : f32
    %11 = vector.broadcast %cst_11 : f32 to vector<16x8xf32>
    %12 = arith.maximumf %10, %11 : vector<16x8xf32>
    %c0_12 = arith.constant 0 : index
    %c0_13 = arith.constant 0 : index
    %13 = vector.load %arg7[%c0_12, %c0_13] : memref<8x16xf32, #tpu.memory_space<vmem>>, vector<8x16xf32>
    %cst_14 = arith.constant dense<0.000000e+00> : vector<8x8xf32>
    %14 = tpu.matmul %13, %12, %cst_14 {dimension_numbers = #tpu.dot_dimension_numbers<[1], [0], [0], [1], [0, 0, 1, 1], [], []>} : vector<8x16xf32>, vector<16x8xf32>, vector<8x8xf32> -> vector<8x8xf32>
    %c0_15 = arith.constant 0 : index
    %c0_16 = arith.constant 0 : index
    %15 = vector.load %arg8[%c0_15, %c0_16] : memref<8x1xf32, #tpu.memory_space<vmem>>, vector<8x1xf32>
    %16 = vector.broadcast %15 : vector<8x1xf32> to vector<8x8xf32>
    %17 = arith.addf %14, %16 : vector<8x8xf32>
    %18 = vector.extract_strided_slice %17 {offsets = [0, 0], sizes = [4, 8], strides = [1, 1]} : vector<8x8xf32> to vector<4x8xf32>
    %19 = vector.extract_strided_slice %17 {offsets = [4, 0], sizes = [4, 8], strides = [1, 1]} : vector<8x8xf32> to vector<4x8xf32>
    %20 = math.exp %18 : vector<4x8xf32>
    %21 = arith.mulf %2, %20 : vector<4x8xf32>
    %22 = arith.addf %19, %21 : vector<4x8xf32>
    %23 = tpu.concatenate %1, %22 in 0 : vector<4x8xf32>, vector<4x8xf32> -> vector<8x8xf32>
    %c0_17 = arith.constant 0 : index
    %c0_18 = arith.constant 0 : index
    %24 = vector.load %arg9[%c0_17, %c0_18] : memref<8x8xf32, #tpu.memory_space<vmem>>, vector<8x8xf32>
    tpu.vector_store %arg9[%c0_17, %c0_18], %23 {strides = array<i32>} : memref<8x8xf32, #tpu.memory_space<vmem>>, vector<8x8xf32>,
    %c0_19 = arith.constant 0 : index
    %c0_20 = arith.constant 0 : index
    %25 = vector.load %arg3[%c0_19, %c0_20] : memref<1x8xf32, #tpu.memory_space<vmem>>, vector<1x8xf32>
    %cst_21 = arith.constant dense<0.000000e+00> : vector<8xf32>
    %26 = vector.multi_reduction <add>, %18, %cst_21 [0] : vector<4x8xf32> to vector<8xf32>
    %27 = vector.shape_cast %26 : vector<8xf32> to vector<1x8xf32>
    %28 = arith.subf %25, %27 : vector<1x8xf32>
    %c0_22 = arith.constant 0 : index
    %c0_23 = arith.constant 0 : index
    %29 = vector.load %arg10[%c0_22, %c0_23] : memref<1x8xf32, #tpu.memory_space<vmem>>, vector<1x8xf32>
    tpu.vector_store %arg10[%c0_22, %c0_23], %28 {strides = array<i32>} : memref<1x8xf32, #tpu.memory_space<vmem>>, vector<1x8xf32>,
    return
  }
  func.func @transform_0(%arg0: i32) -> (i32, i32) {
    %c0_i32 = arith.constant 0 : i32
    %c0_i32_0 = arith.constant 0 : i32
    return %c0_i32, %arg0 : i32, i32
  }
  func.func @transform_1(%arg0: i32) -> (i32, i32) {
    %c0_i32 = arith.constant 0 : i32
    %c0_i32_0 = arith.constant 0 : i32
    return %c0_i32, %arg0 : i32, i32
  }
  func.func @transform_2(%arg0: i32) -> (i32, i32) {
    %c0_i32 = arith.constant 0 : i32
    %c0_i32_0 = arith.constant 0 : i32
    return %c0_i32, %arg0 : i32, i32
  }
  func.func @transform_3(%arg0: i32) -> (i32, i32) {
    %c0_i32 = arith.constant 0 : i32
    %c0_i32_0 = arith.constant 0 : i32
    %c0_i32_1 = arith.constant 0 : i32
    return %c0_i32, %c0_i32_0 : i32, i32
  }
  func.func @transform_4(%arg0: i32) -> (i32, i32) {
    %c0_i32 = arith.constant 0 : i32
    %c0_i32_0 = arith.constant 0 : i32
    %c0_i32_1 = arith.constant 0 : i32
    return %c0_i32, %c0_i32_0 : i32, i32
  }
  func.func @transform_5(%arg0: i32) -> (i32, i32) {
    %c0_i32 = arith.constant 0 : i32
    %c0_i32_0 = arith.constant 0 : i32
    %c0_i32_1 = arith.constant 0 : i32
    return %c0_i32, %c0_i32_0 : i32, i32
  }
  func.func @transform_6(%arg0: i32) -> (i32, i32) {
    %c0_i32 = arith.constant 0 : i32
    %c0_i32_0 = arith.constant 0 : i32
    %c0_i32_1 = arith.constant 0 : i32
    return %c0_i32, %c0_i32_0 : i32, i32
  }
  func.func @transform_7(%arg0: i32) -> (i32, i32) {
    %c0_i32 = arith.constant 0 : i32
    %c0_i32_0 = arith.constant 0 : i32
    %c0_i32_1 = arith.constant 0 : i32
    return %c0_i32, %c0_i32_0 : i32, i32
  }
  func.func @transform_8(%arg0: i32) -> (i32, i32) {
    %c0_i32 = arith.constant 0 : i32
    %c0_i32_0 = arith.constant 0 : i32
    return %c0_i32, %arg0 : i32, i32
  }
  func.func @transform_9(%arg0: i32) -> (i32, i32) {
    %c0_i32 = arith.constant 0 : i32
    %c0_i32_0 = arith.constant 0 : i32
    return %c0_i32, %arg0 : i32, i32
  }
}

</mosaic_0001>

<bundles_post_ra>
// kernel: tpu_custom_call.1
= control target key start
LH: loop header
LB: loop body
LE: loop exit
PB: predicated region body
PF: predicated region fallthrough
CT: control target
= control target key end

     0   :  { %15 = vsyncpa [#allocation3], 0  ;;  %vm48_vm0 = vcmask 1043456   ;;  %vm41_vm1 = vcmask 31744   ;;  %vm127_vm2 = vcmask 130048   ;;  %s554_s0 = inlined_call_operand.vmem [shape: f32[16,8], index: 0, kind: input, shape index: {}]   ;;  %s555_s1 = inlined_call_operand.vmem [shape: f32[8,8], index: 1, kind: input, shape index: {}]   ;;  %s556_s2 = inlined_call_operand.vmem [shape: f32[1,8], index: 2, kind: input, shape index: {}]   ;;  %s557_s3 = inlined_call_operand.vmem [shape: f32[16,16], index: 3, kind: input, shape index: {}]   ;;  %s558_s4 = inlined_call_operand.vmem [shape: f32[16,4], index: 4, kind: input, shape index: {}]   ;;  %s559_s5 = inlined_call_operand.vmem [shape: f32[16,1], index: 5, kind: input, shape index: {}]   ;;  %s560_s6 = inlined_call_operand.vmem [shape: f32[8,16], index: 6, kind: input, shape index: {}]   ;;  %s561_s7 = inlined_call_operand.vmem [shape: f32[8,1], index: 7, kind: input, shape index: {}]   ;;  %s562_s8 = inlined_call_operand.hbm [shape: f32[8,8], index: 8, kind: output, shape index: {0}]   ;;  %s563_s9 = inlined_call_operand.hbm [shape: f32[1,8], index: 9, kind: output, shape index: {1}]  }
   0x1   :  { %v501_v0 = vld [vmem:[%s555_s1] sm:$0xf]  ;;  %v34_v1 = vld [vmem:[%s554_s0 + $0x8] sm:$0xff] }
   0x2   :  { %v39_v2 = vld [vmem:[%s558_s4] sm:$0xff]  ;;  %371 = vmatprep.subr.msk.mxu0 %vm48_vm0, %v501_v0  ;;  %376 = vmatprep.subr.mxu1 %v34_v1  ;;  %v40_v3 = vld [vmem:[%s558_s4 + $0x8] sm:$0xff] }
   0x3   :  { %v33_v4 = vld [vmem:[%s554_s0] sm:$0xff]  ;;  %372 = vmatpush3.msk.msra.mxu0 %vm48_vm0, %v501_v0  ;;  %373 = vmatprep.mubr.msk.f32.mxu0 %vm41_vm1, %v39_v2  ;;  %v38_v6 = vld [vmem:[%s557_s3 + $0x8] sm:$0xff] }
   0x4   :  { %v37_v5 = vld [vmem:[%s557_s3] sm:$0xff]  ;;  %377 = vmatpush3.msra.mxu1 %v34_v1  ;;  %374 = vmatmul.mubr.msk.f32.vlgmr.msra.gmra.mxu0 %vm41_vm1, %v40_v3  ;;  %v210_v7 = vld [vmem:[%s559_s5 + $0x8] sm:$0xff] }
   0x5   :  { %16 = vsyncpa [#allocation5], 0  ;;  %378 = vmatprep.subr.mxu1 %v33_v4  ;;  %380 = vmatprep.mubr.msk.f32.mxu1 %vm127_vm2, %v37_v5  ;;  %v443_v8 = vmov 0   ;;  %v209_v9 = vld [vmem:[%s559_s5] sm:$0xff]  ;;  %v444_v10 = vmov 0.0   ;;  %vm445_vm3 = vmmov 0  }
   0x6   :  { %379 = vmatpush3.msra.mxu1 %v33_v4  ;;  %395 = vset.pattern.permute.xlu0 %v443_v8  ;;  %v226_v11 = vld [vmem:[%s561_s7] sm:$0xff]  ;;  %vm316_vm4 = vcmask 60416   ;;  %vm325_vm5 = vcmask 57344  }
   0x7   :  { %381 = vmatmul.mubr.msk.f32.vlgmr.msra.gmra.mxu1 %vm127_vm2, %v38_v6  ;;  %218 = vperm.xlu0 %395, %v210_v7   ;;  %v225_v24 = vld [vmem:[%s560_s6] sm:$0xff]  ;;  %s446_s6 = smov [#allocation4]  }
   0x8   :  { %396 = vset.pattern.permute.xlu1 %v443_v8  ;;  %383 = vmatprep.subr.mxu0 %v444_v10  ;;  %v315_v36 = vld [vmem:[%s556_s2] sm:$0x1]  ;;  %s343_s28 = sshll.u32 %s446_s6, 4  ;;  %v36_v38 = vld [vmem:[%s555_s1 + $0x4] sm:$0xf]  ;;  %s344_s28 = int_to_ptr.vmem [resolvable:$true] %s343_s28 }
   0x9   :  { %387 = vmatprep.mubr.msk.f32.mxu0 %vm445_vm3, %v444_v10  ;;  %229 = vperm.xlu1 %396, %v226_v11   ;;  %s399_s10 = scalar_lea.vmem %s344_s28, 16  ;;  %s403_s11 = scalar_lea.vmem %s344_s28, 32 }
   0xa   :  { %p400_p0 = scmp.ne.s32.totalorder %s344_s28, %s399_s10  ;;  %p404_p1 = scmp.lt.s32.totalorder %s344_s28, %s344_s28 }
   0xb   :  { %213 = vperm.xlu0 %395, %v209_v9   ;;  %p405_p2 = scmp.lt.s32.totalorder %s403_s11, %s399_s10 }
   0xd   :  { %p406_p3 = por %p405_p2, %p404_p1 }
   0xf   :  { %p407_p4 = pnand %p406_p3, %p400_p0 }
  0x82   :  { %v219_v12 = vpop.permute.xlu0 %218 }
  0x84   :  { %v230_v25 = vpop.permute.xlu1 %229 }
  0x86   :  { %v214_v20 = vpop.permute.xlu0 %213 }
  0xc4   :  { %v375_v13 = vpop.f32.mrf.mxu0 }
  0xc6   :  { %v118_v16 = vpop.f32.mrf.mxu0 }
  0xc7   :  { %v382_v14 = vpop.f32.mrf.mxu1 }
  0xc8   :  { %v206_v15 = vadd.f32 %v382_v14, %v375_v13 }
  0xc9   :  { %v200_v17 = vpop.f32.mrf.mxu1 }
  0xca   :  { %v222_v18 = vadd.f32 %v219_v12, %v206_v15  ;;  %v201_v19 = vadd.f32 %v200_v17, %v118_v16 }
  0xcc   :  { %v224_v21 = vmax.f32 %v222_v18, 0.0  ;;  %v221_v22 = vadd.f32 %v214_v20, %v201_v19 }
  0xce   :  { %v223_v23 = vmax.f32 %v221_v22, 0.0  ;;  %384 = vmatpush3.msra.mxu0 %v224_v21 }
  0xcf   :  { %385 = vmatprep.subr.mxu0 %v444_v10 }
  0xd0   :  { %386 = vmatpush3.msra.mxu0 %v223_v23 }
  0xd1   :  { %388 = vmatmul.mubr.msk.f32.vlgmr.msra.gmra.mxu0 %vm127_vm2, %v225_v24 }
 0x191   :  { %v301_v26 = vpop.f32.mrf.mxu0 }
 0x192   :  { %v302_v27 = vadd.f32 %v301_v26, %v230_v25 }
 0x193   :  { %v389_v28 = vpop.f32.mrf.mxu0 }
 0x194   :  { %v305_v29 = vmul.f32 1.442695, %v302_v27  ;;  %v317_v30 = vsel %vm316_vm4, %v302_v27, 0.0 }
 0x195   :  { %v318_v31 = vrot.slane %v317_v30, 4 }
 0x196   :  { %397 = vpow2.f32 %v305_v29 }
 0x197   :  { %v319_v32 = vadd.f32 %v318_v31, %v317_v30 }
 0x199   :  { %v320_v33 = vrot.slane %v319_v32, 2 }
 0x19b   :  { %v321_v34 = vadd.f32 %v320_v33, %v319_v32 }
 0x19d   :  { %v322_v35 = vrot.slane %v321_v34, 1 }
 0x19f   :  { %v323_v37 = vadd.f32 %v322_v35, %v321_v34 }
 0x1a1   :  { %v324_v39 = vsub.f32 %v315_v36, %v323_v37 }
 0x1a3   :  { %v398_v40 = vpop.eup %397  ;;  %326 = vst.msk [vmem:[#allocation4] sm:$0x1] %vm325_vm5, %v324_v39 }
 0x1a4   :  { %v307_v41 = vmul.f32 %v398_v40, %v36_v38 }
 0x1a5   :  { %410 = shalt.err (!%p407_p4)
}
 0x1a6   :  { %346 = dma.vmem_to_hbm [thread:$0]  %s344_s28, 16, %s563_s9, [#allocation5]   ;;  %v309_v42 = vrot.slane %v307_v41, 4  ;;  %vm313_vm6 = vcmask 64512  }
 0x1a7   :  { %s447_s13 = smov [#allocation2]  }
 0x1a8   :  { %s333_s1 = sshll.u32 %s447_s13, 4  ;;  %v311_v43 = vadd.f32 %v309_v42, %v302_v27  ;;  %s334_s1 = int_to_ptr.vmem [resolvable:$true] %s333_s1 }
 0x1a9   :  { %s419_s14 = scalar_lea.vmem %s334_s1, 128  ;;  %p424_p6 = scmp.lt.s32.totalorder %s334_s1, %s334_s1 }
 0x1aa   :  { %v312_v44 = vsel %vm48_vm0, %v501_v0, %v311_v43  ;;  %p420_p5 = scmp.ne.s32.totalorder %s334_s1, %s419_s14  ;;  %p425_p7 = scmp.lt.s32.totalorder %s419_s14, %s419_s14 }
 0x1ab   :  { %314 = vst.msk [vmem:[#allocation2] sm:$0xff] %vm313_vm6, %v312_v44 }
 0x1ac   :  { %p426_p8 = por %p425_p7, %p424_p6 }
 0x1ae   :  { %p427_p9 = pnand %p426_p8, %p420_p5 }
 0x1b0   :  { %430 = shalt.err (!%p427_p9)
}
 0x1b1   :  { %336 = dma.vmem_to_hbm [thread:$0]  %s334_s1, 128, %s562_s8, [#allocation3]  }
 0x1b2   :  { %439 = dma.done.wait [#allocation3], 128  }
 0x1b3   :  { %440 = vsyncadd [#allocation3], 4294967168 }
 0x1b4   :  { %441 = dma.done.wait [#allocation5], 16  }
 0x1b5   :  { %442 = vsyncadd [#allocation5], 4294967280 }
 0x1b6   :  { %353 = vsyncpa [#allocation3], 1 }
 0x1b7   :  { %354 = vsyncpa [#allocation5], 1 }

</bundles_post_ra>
